<compile_context>
chip_gen: v6e
topology: v6e:2x2x1
jax: 0.10.0
libtpu: 0.0.40
codegen_flags: <defaults>
</compile_context>

<pallas_src>
import jax
import jax.numpy as jnp
from jax.experimental import pallas as pl
from jax.experimental.pallas import tpu as pltpu


def _encoder_kernel(x_ref, w1_ref, wh_ref, bh_ref, out_ref):
    # hidden = relu(x_aug @ W1_aug)      (bias folded into ones-column of x)
    h = jnp.dot(x_ref[...], w1_ref[...], preferred_element_type=jnp.float32)
    h = jnp.maximum(h, 0.0)
    # fused heads: [ mu | log_var | zero-pad ] in one lane-dense matmul
    out_ref[...] = (
        jnp.dot(h, wh_ref[...], preferred_element_type=jnp.float32) + bh_ref[...]
    )


def _round_up(x, m):
    return ((x + m - 1) // m) * m


def encoder_forward(x, params):
    """x: (B, input_dim + cond_dim) float32.  Returns (mean, log_var)."""
    w1, b1 = params["w1"], params["b1"]        # (in, H), (1, H)
    wmu, bmu = params["wmu"], params["bmu"]    # (H, L), (1, L)
    wvar, bvar = params["wvar"], params["bvar"]

    B, in_dim = x.shape
    H = w1.shape[1]
    L = wmu.shape[1]

    # ---- fold b1 into W1 (ones column on x); pad contraction dim to 128 ---
    in_aug = in_dim + 1
    K = _round_up(in_aug, 128)
    x_aug = jnp.concatenate([x, jnp.ones((B, 1), x.dtype)], axis=1)
    x_aug = jnp.pad(x_aug, ((0, 0), (0, K - in_aug)))           # (B, K)
    w1_aug = jnp.concatenate([w1, b1], axis=0)                  # (in+1, H)
    w1_aug = jnp.pad(w1_aug, ((0, K - in_aug), (0, 0)))         # (K, H)

    # ---- pad hidden width to a lane multiple (zero cols -> relu(0)=0) -----
    Hp = _round_up(H, 128)
    w1_aug = jnp.pad(w1_aug, ((0, 0), (0, Hp - H)))             # (K, Hp)

    # ---- fuse mu/var heads; pad lanes to 128 and rows to Hp ---------------
    n_head = 2 * L
    Np = _round_up(max(n_head, 1), 128)
    w_head = jnp.concatenate([wmu, wvar], axis=1)               # (H, 2L)
    w_head = jnp.pad(w_head, ((0, Hp - H), (0, Np - n_head)))   # (Hp, Np)
    b_head = jnp.concatenate([bmu, bvar], axis=1)               # (1, 2L)
    b_head = jnp.pad(b_head, ((0, 0), (0, Np - n_head)))        # (1, Np)

    # ---- batch tiling: parallel grid axis (uses both TCs on v7x) ----------
    B8 = _round_up(B, 8)
    TB = B8 if B8 <= 512 else 256
    B_pad = _round_up(B8, TB)
    if B_pad != B:
        x_aug = jnp.pad(x_aug, ((0, B_pad - B), (0, 0)))
    grid = (B_pad // TB,)

    out = pl.pallas_call(
        _encoder_kernel,
        out_shape=jax.ShapeDtypeStruct((B_pad, Np), jnp.float32),
        grid=grid,
        in_specs=[
            pl.BlockSpec((TB, K), lambda i: (i, 0)),    # x tile (per step)
            pl.BlockSpec((K, Hp), lambda i: (0, 0)),    # W1_aug (replicated)
            pl.BlockSpec((Hp, Np), lambda i: (0, 0)),   # fused head W
            pl.BlockSpec((1, Np), lambda i: (0, 0)),    # fused head b
        ],
        out_specs=pl.BlockSpec((TB, Np), lambda i: (i, 0)),
        compiler_params=pltpu.CompilerParams(
            dimension_semantics=("parallel",)),
    )(x_aug, w1_aug, w_head, b_head)

    mean = out[:B, :L]
    log_var = out[:B, L:n_head]
    return mean, log_var


def init_params(key, input_dim, cond_dim, hidden_dim, latent_dim):
    """Deterministic synthetic parameters (JAX layout: (in, out))."""
    ks = jax.random.split(key, 6)
    in_dim = input_dim + cond_dim
    scale = 0.1
    return {
        "w1":   scale * jax.random.normal(ks[0], (in_dim, hidden_dim), jnp.float32),
        "b1":   scale * jax.random.normal(ks[1], (1, hidden_dim), jnp.float32),
        "wmu":  scale * jax.random.normal(ks[2], (hidden_dim, latent_dim), jnp.float32),
        "bmu":  scale * jax.random.normal(ks[3], (1, latent_dim), jnp.float32),
        "wvar": scale * jax.random.normal(ks[4], (hidden_dim, latent_dim), jnp.float32),
        "bvar": scale * jax.random.normal(ks[5], (1, latent_dim), jnp.float32),
    }


def reference_forward(x, params):
    """Pure-JAX reference of the PyTorch Encoder.forward."""
    h = jax.nn.relu(x @ params["w1"] + params["b1"])
    mean = h @ params["wmu"] + params["bmu"]
    log_var = h @ params["wvar"] + params["bvar"]
    return mean, log_var


if __name__ == "__main__":
    # forward() takes x = concat([input, condition]) -> (batch, input_dim + cond_dim)
    batch, input_dim, cond_dim, hidden_dim, latent_dim = 8, 16, 4, 32, 2

    key = jax.random.PRNGKey(0)
    k_x, k_p = jax.random.split(key)
    x = jax.random.normal(k_x, (batch, input_dim + cond_dim), jnp.float32)
    params = init_params(k_p, input_dim, cond_dim, hidden_dim, latent_dim)

    mean, log_var = encoder_forward(x, params)
    jax.block_until_ready((mean, log_var))

    # correctness check against pure-JAX reference
    mean_ref, log_var_ref = reference_forward(x, params)
    assert mean.shape == (batch, latent_dim) and log_var.shape == (batch, latent_dim)
    assert jnp.allclose(mean, mean_ref, atol=1e-5), "mean mismatch"
    assert jnp.allclose(log_var, log_var_ref, atol=1e-5), "log_var mismatch"

    print("KERNEL_OK")
</pallas_src>

<mosaic_0001>
module attributes {stable_mosaic.version = 11 : i64} {
  func.func @_encoder_kernel(%arg0: i32, %arg1: memref<8x128xf32, #tpu.memory_space<vmem>>, %arg2: memref<128x128xf32, #tpu.memory_space<vmem>>, %arg3: memref<128x128xf32, #tpu.memory_space<vmem>>, %arg4: memref<1x128xf32, #tpu.memory_space<vmem>>, %arg5: memref<8x128xf32, #tpu.memory_space<vmem>>) attributes {dimension_semantics = [#tpu.dimension_semantics<parallel>], iteration_bounds = array<i64: 1>, scalar_prefetch = 0 : i64, scratch_operands = 0 : i64, tpu.core_type = #tpu.core_type<tc>, window_params = [{transform_indices = @transform_0, window_bounds = array<i64: 8, 128>}, {pipeline_mode = #tpu.pipeline_mode<synchronous>, transform_indices = @transform_1, window_bounds = array<i64: 128, 128>}, {pipeline_mode = #tpu.pipeline_mode<synchronous>, transform_indices = @transform_2, window_bounds = array<i64: 128, 128>}, {pipeline_mode = #tpu.pipeline_mode<synchronous>, transform_indices = @transform_3, window_bounds = array<i64: 1, 128>}, {transform_indices = @transform_4, window_bounds = array<i64: 8, 128>}]} {
    %c0 = arith.constant 0 : index
    %c0_0 = arith.constant 0 : index
    %0 = vector.load %arg1[%c0, %c0_0] : memref<8x128xf32, #tpu.memory_space<vmem>>, vector<8x128xf32>
    %c0_1 = arith.constant 0 : index
    %c0_2 = arith.constant 0 : index
    %1 = vector.load %arg2[%c0_1, %c0_2] : memref<128x128xf32, #tpu.memory_space<vmem>>, vector<128x128xf32>
    %cst = arith.constant dense<0.000000e+00> : vector<8x128xf32>
    %2 = tpu.matmul %0, %1, %cst {dimension_numbers = #tpu.dot_dimension_numbers<[1], [0], [0], [1], [0, 0, 1, 1], [], []>} : vector<8x128xf32>, vector<128x128xf32>, vector<8x128xf32> -> vector<8x128xf32>
    %cst_3 = arith.constant 0.000000e+00 : f32
    %3 = vector.broadcast %cst_3 : f32 to vector<8x128xf32>
    %4 = arith.maximumf %2, %3 : vector<8x128xf32>
    %c0_4 = arith.constant 0 : index
    %c0_5 = arith.constant 0 : index
    %5 = vector.load %arg3[%c0_4, %c0_5] : memref<128x128xf32, #tpu.memory_space<vmem>>, vector<128x128xf32>
    %cst_6 = arith.constant dense<0.000000e+00> : vector<8x128xf32>
    %6 = tpu.matmul %4, %5, %cst_6 {dimension_numbers = #tpu.dot_dimension_numbers<[1], [0], [0], [1], [0, 0, 1, 1], [], []>} : vector<8x128xf32>, vector<128x128xf32>, vector<8x128xf32> -> vector<8x128xf32>
    %c0_7 = arith.constant 0 : index
    %c0_8 = arith.constant 0 : index
    %7 = vector.load %arg4[%c0_7, %c0_8] : memref<1x128xf32, #tpu.memory_space<vmem>>, vector<1x128xf32>
    %8 = vector.broadcast %7 : vector<1x128xf32> to vector<8x128xf32>
    %9 = arith.addf %6, %8 : vector<8x128xf32>
    %c0_9 = arith.constant 0 : index
    %c0_10 = arith.constant 0 : index
    %10 = vector.load %arg5[%c0_9, %c0_10] : memref<8x128xf32, #tpu.memory_space<vmem>>, vector<8x128xf32>
    tpu.vector_store %arg5[%c0_9, %c0_10], %9 {strides = array<i32>} : memref<8x128xf32, #tpu.memory_space<vmem>>, vector<8x128xf32>,
    return
  }
  func.func @transform_0(%arg0: i32) -> (i32, i32) {
    %c0_i32 = arith.constant 0 : i32
    %c0_i32_0 = arith.constant 0 : i32
    return %arg0, %c0_i32 : i32, i32
  }
  func.func @transform_1(%arg0: i32) -> (i32, i32) {
    %c0_i32 = arith.constant 0 : i32
    %c0_i32_0 = arith.constant 0 : i32
    %c0_i32_1 = arith.constant 0 : i32
    return %c0_i32, %c0_i32_0 : i32, i32
  }
  func.func @transform_2(%arg0: i32) -> (i32, i32) {
    %c0_i32 = arith.constant 0 : i32
    %c0_i32_0 = arith.constant 0 : i32
    %c0_i32_1 = arith.constant 0 : i32
    return %c0_i32, %c0_i32_0 : i32, i32
  }
  func.func @transform_3(%arg0: i32) -> (i32, i32) {
    %c0_i32 = arith.constant 0 : i32
    %c0_i32_0 = arith.constant 0 : i32
    %c0_i32_1 = arith.constant 0 : i32
    return %c0_i32, %c0_i32_0 : i32, i32
  }
  func.func @transform_4(%arg0: i32) -> (i32, i32) {
    %c0_i32 = arith.constant 0 : i32
    %c0_i32_0 = arith.constant 0 : i32
    return %arg0, %c0_i32 : i32, i32
  }
}

</mosaic_0001>

<bundles_post_ra>
// kernel: tpu_custom_call.1
= control target key start
LH: loop header
LB: loop body
LE: loop exit
PB: predicated region body
PF: predicated region fallthrough
CT: control target
= control target key end

     0   :  { %9 = vsyncpa [#allocation3], 0  ;;  %s536_s0 = inlined_call_operand.hbm [shape: f32[8,128], index: 0, kind: input, shape index: {}]   ;;  %s537_s1 = inlined_call_operand.hbm [shape: f32[128,128], index: 1, kind: input, shape index: {}]   ;;  %s538_s2 = inlined_call_operand.hbm [shape: f32[128,128], index: 2, kind: input, shape index: {}]   ;;  %s539_s3 = inlined_call_operand.vmem [shape: f32[1,128], index: 3, kind: input, shape index: {}]   ;;  %s540_s4 = inlined_call_operand.hbm [shape: f32[8,128], index: 4, kind: output, shape index: {}]  }
   0x1   :  { %10 = vsyncpa [#allocation6], 0 }
   0x2   :  { %11 = vsyncpa [#allocation4], 0  ;;  %s454_s15 = smov [#allocation5]  }
   0x3   :  { %s27_s16 = sshll.u32 %s454_s15, 4  ;;  %s28_s16 = int_to_ptr.vmem [resolvable:$true] %s27_s16 }
   0x4   :  { %s376_s17 = scalar_lea.vmem %s28_s16, 2048  ;;  %p381_p1 = scmp.lt.s32.totalorder %s28_s16, %s28_s16 }
   0x5   :  { %p377_p0 = scmp.ne.s32.totalorder %s28_s16, %s376_s17  ;;  %p382_p2 = scmp.lt.s32.totalorder %s376_s17, %s376_s17 }
   0x7   :  { %p383_p3 = por %p382_p2, %p381_p1 }
   0x9   :  { %p384_p4 = pnand %p383_p3, %p377_p0 }
   0xb   :  { %387 = shalt.err (!%p384_p4)
}
   0xc   :  { %s455_s18 = smov 128   ;;  %s456_s19 = smov 8  }
   0xd   :  { %33 = dma.hbm_to_vmem [thread:$0]  %s537_s1, 2048, %s28_s16, [#allocation6], %s455_s18, %s455_s18, %s456_s19  }
   0xe   :  { %s457_s22 = smov [#allocation2]   ;;  %s458_s24 = smov [#allocation7]  }
   0xf   :  { %s18_s23 = sshll.u32 %s457_s22, 4  ;;  %s39_s25 = sshll.u32 %s458_s24, 4  ;;  %s19_s23 = int_to_ptr.vmem [resolvable:$true] %s18_s23  ;;  %s40_s25 = int_to_ptr.vmem [resolvable:$true] %s39_s25 }
  0x10   :  { %s396_s26 = scalar_lea.vmem %s19_s23, 128  ;;  %p401_p6 = scmp.lt.s32.totalorder %s19_s23, %s19_s23 }
  0x11   :  { %p397_p5 = scmp.ne.s32.totalorder %s19_s23, %s396_s26  ;;  %p402_p7 = scmp.lt.s32.totalorder %s396_s26, %s396_s26 }
  0x13   :  { %p403_p8 = por %p402_p7, %p401_p6 }
  0x15   :  { %p404_p9 = pnand %p403_p8, %p397_p5 }
  0x17   :  { %407 = shalt.err (!%p404_p9)
}
  0x18   :  { %21 = dma.hbm_to_vmem [thread:$0]  %s536_s0, 128, %s19_s23, [#allocation3]  }
  0x19   :  { %s416_s29 = scalar_lea.vmem %s40_s25, 2048  ;;  %p421_p11 = scmp.lt.s32.totalorder %s40_s25, %s40_s25 }
  0x1a   :  { %p417_p10 = scmp.ne.s32.totalorder %s40_s25, %s416_s29  ;;  %p422_p12 = scmp.lt.s32.totalorder %s416_s29, %s416_s29 }
  0x1c   :  { %p423_p13 = por %p422_p12, %p421_p11 }
  0x1e   :  { %p424_p0 = pnand %p423_p13, %p417_p10 }
  0x20   :  { %427 = shalt.err (!%p424_p0)
}
  0x21   :  { %45 = dma.hbm_to_vmem [thread:$0]  %s538_s2, 2048, %s40_s25, [#allocation6], %s455_s18, %s455_s18, %s456_s19  }
  0x22   :  { %448 = dma.done.wait [#allocation3], 128  }
  0x23   :  { %449 = vsyncadd [#allocation3], 4294967168 }
  0x24   :  { %450 = dma.done.wait [#allocation6], 4096  }
  0x25   :  { %451 = vsyncadd [#allocation6], 4294963200  ;;  %v459_v0 = vmov 0.0   ;;  %vm460_vm0 = vmmov 0   ;;  %v73_v1 = vld [vmem:[#allocation5 + $0x78] sm:$0xff]  ;;  %v72_v2 = vld [vmem:[#allocation5 + $0x70] sm:$0xff] }
  0x26   :  { %290 = vmatprep.subr.mxu0 %v459_v0  ;;  %322 = vmatprep.mubr.msk.f32.mxu0 %vm460_vm0, %v459_v0  ;;  %v71_v3 = vld [vmem:[#allocation5 + $0x68] sm:$0xff]  ;;  %v70_v4 = vld [vmem:[#allocation5 + $0x60] sm:$0xff]  ;;  %v160_v5 = vld [vmem:[#allocation7 + $0x78] sm:$0xff]  ;;  %s461_s5 = smov [#allocation8]  }
  0x27   :  { %325 = vmatprep.subr.mxu1 %v459_v0  ;;  %357 = vmatprep.mubr.msk.f32.mxu1 %vm460_vm0, %v459_v0  ;;  %v69_v6 = vld [vmem:[#allocation5 + $0x58] sm:$0xff]  ;;  %v159_v7 = vld [vmem:[#allocation7 + $0x70] sm:$0xff]  ;;  %v158_v8 = vld [vmem:[#allocation7 + $0x68] sm:$0xff]  ;;  %s245_s6 = sshll.u32 %s461_s5, 4  ;;  %s246_s6 = int_to_ptr.vmem [resolvable:$true] %s245_s6 }
  0x28   :  { %291 = vmatpush3.msra.mxu0 %v73_v1  ;;  %326 = vmatpush3.msra.mxu1 %v160_v5  ;;  %v68_v9 = vld [vmem:[#allocation5 + $0x50] sm:$0xff]  ;;  %v157_v10 = vld [vmem:[#allocation7 + $0x60] sm:$0xff]  ;;  %v67_v11 = vld [vmem:[#allocation5 + $0x48] sm:$0xff]  ;;  %s428_s7 = scalar_lea.vmem %s246_s6, 128  ;;  %p433_p2 = scmp.lt.s32.totalorder %s246_s6, %s246_s6 }
  0x29   :  { %292 = vmatprep.subr.mxu0 %v459_v0  ;;  %327 = vmatprep.subr.mxu1 %v459_v0  ;;  %v156_v12 = vld [vmem:[#allocation7 + $0x58] sm:$0xff]  ;;  %v66_v13 = vld [vmem:[#allocation5 + $0x40] sm:$0xff]  ;;  %v155_v14 = vld [vmem:[#allocation7 + $0x50] sm:$0xff]  ;;  %p429_p1 = scmp.ne.s32.totalorder %s246_s6, %s428_s7  ;;  %p434_p3 = scmp.lt.s32.totalorder %s428_s7, %s428_s7 }
  0x2a   :  { %293 = vmatpush3.msra.mxu0 %v72_v2  ;;  %328 = vmatpush3.msra.mxu1 %v159_v7  ;;  %v65_v15 = vld [vmem:[#allocation5 + $0x38] sm:$0xff]  ;;  %v154_v16 = vld [vmem:[#allocation7 + $0x48] sm:$0xff]  ;;  %v64_v17 = vld [vmem:[#allocation5 + $0x30] sm:$0xff] }
  0x2b   :  { %294 = vmatprep.subr.mxu0 %v459_v0  ;;  %329 = vmatprep.subr.mxu1 %v459_v0  ;;  %v153_v18 = vld [vmem:[#allocation7 + $0x40] sm:$0xff]  ;;  %v63_v19 = vld [vmem:[#allocation5 + $0x28] sm:$0xff]  ;;  %v152_v20 = vld [vmem:[#allocation7 + $0x38] sm:$0xff]  ;;  %p435_p4 = por %p434_p3, %p433_p2 }
  0x2c   :  { %295 = vmatpush3.msra.mxu0 %v71_v3  ;;  %330 = vmatpush3.msra.mxu1 %v158_v8  ;;  %v62_v21 = vld [vmem:[#allocation5 + $0x20] sm:$0xff]  ;;  %v151_v22 = vld [vmem:[#allocation7 + $0x30] sm:$0xff]  ;;  %v61_v23 = vld [vmem:[#allocation5 + $0x18] sm:$0xff] }
  0x2d   :  { %296 = vmatprep.subr.mxu0 %v459_v0  ;;  %331 = vmatprep.subr.mxu1 %v459_v0  ;;  %v150_v24 = vld [vmem:[#allocation7 + $0x28] sm:$0xff]  ;;  %v60_v25 = vld [vmem:[#allocation5 + $0x10] sm:$0xff]  ;;  %v149_v26 = vld [vmem:[#allocation7 + $0x20] sm:$0xff]  ;;  %p436_p5 = pnand %p435_p4, %p429_p1 }
  0x2e   :  { %297 = vmatpush3.msra.mxu0 %v70_v4  ;;  %332 = vmatpush3.msra.mxu1 %v157_v10  ;;  %v59_v27 = vld [vmem:[#allocation5 + $0x8] sm:$0xff]  ;;  %v148_v28 = vld [vmem:[#allocation7 + $0x18] sm:$0xff]  ;;  %v58_v29 = vld [vmem:[#allocation5] sm:$0xff] }
  0x2f   :  { %298 = vmatprep.subr.mxu0 %v459_v0  ;;  %333 = vmatprep.subr.mxu1 %v459_v0  ;;  %v57_v30 = vld [vmem:[#allocation2] sm:$0xff]  ;;  %v147_v31 = vld [vmem:[#allocation7 + $0x10] sm:$0xff]  ;;  %v146_v32 = vld [vmem:[#allocation7 + $0x8] sm:$0xff] }
  0x30   :  { %299 = vmatpush3.msra.mxu0 %v69_v6  ;;  %334 = vmatpush3.msra.mxu1 %v156_v12  ;;  %v145_v33 = vld [vmem:[#allocation7] sm:$0xff]  ;;  %v255_v37 = vld [vmem:[%s539_s3] ss:$0 sm:$0xff] }
  0x31   :  { %300 = vmatprep.subr.mxu0 %v459_v0  ;;  %335 = vmatprep.subr.mxu1 %v459_v0 }
  0x32   :  { %301 = vmatpush3.msra.mxu0 %v68_v9  ;;  %336 = vmatpush3.msra.mxu1 %v155_v14 }
  0x33   :  { %302 = vmatprep.subr.mxu0 %v459_v0  ;;  %337 = vmatprep.subr.mxu1 %v459_v0 }
  0x34   :  { %303 = vmatpush3.msra.mxu0 %v67_v11  ;;  %338 = vmatpush3.msra.mxu1 %v154_v16 }
  0x35   :  { %304 = vmatprep.subr.mxu0 %v459_v0  ;;  %339 = vmatprep.subr.mxu1 %v459_v0 }
  0x36   :  { %305 = vmatpush3.msra.mxu0 %v66_v13  ;;  %340 = vmatpush3.msra.mxu1 %v153_v18 }
  0x37   :  { %306 = vmatprep.subr.mxu0 %v459_v0  ;;  %341 = vmatprep.subr.mxu1 %v459_v0 }
  0x38   :  { %307 = vmatpush3.msra.mxu0 %v65_v15  ;;  %342 = vmatpush3.msra.mxu1 %v152_v20 }
  0x39   :  { %308 = vmatprep.subr.mxu0 %v459_v0  ;;  %343 = vmatprep.subr.mxu1 %v459_v0 }
  0x3a   :  { %309 = vmatpush3.msra.mxu0 %v64_v17  ;;  %344 = vmatpush3.msra.mxu1 %v151_v22 }
  0x3b   :  { %310 = vmatprep.subr.mxu0 %v459_v0  ;;  %345 = vmatprep.subr.mxu1 %v459_v0 }
  0x3c   :  { %311 = vmatpush3.msra.mxu0 %v63_v19  ;;  %346 = vmatpush3.msra.mxu1 %v150_v24 }
  0x3d   :  { %312 = vmatprep.subr.mxu0 %v459_v0  ;;  %347 = vmatprep.subr.mxu1 %v459_v0 }
  0x3e   :  { %313 = vmatpush3.msra.mxu0 %v62_v21  ;;  %348 = vmatpush3.msra.mxu1 %v149_v26 }
  0x3f   :  { %314 = vmatprep.subr.mxu0 %v459_v0  ;;  %349 = vmatprep.subr.mxu1 %v459_v0 }
  0x40   :  { %315 = vmatpush3.msra.mxu0 %v61_v23  ;;  %350 = vmatpush3.msra.mxu1 %v148_v28 }
  0x41   :  { %316 = vmatprep.subr.mxu0 %v459_v0  ;;  %351 = vmatprep.subr.mxu1 %v459_v0 }
  0x42   :  { %317 = vmatpush3.msra.mxu0 %v60_v25  ;;  %352 = vmatpush3.msra.mxu1 %v147_v31 }
  0x43   :  { %318 = vmatprep.subr.mxu0 %v459_v0  ;;  %353 = vmatprep.subr.mxu1 %v459_v0 }
  0x44   :  { %319 = vmatpush3.msra.mxu0 %v59_v27  ;;  %354 = vmatpush3.msra.mxu1 %v146_v32 }
  0x45   :  { %320 = vmatprep.subr.mxu0 %v459_v0  ;;  %355 = vmatprep.subr.mxu1 %v459_v0 }
  0x46   :  { %321 = vmatpush3.msra.mxu0 %v58_v29  ;;  %356 = vmatpush3.msra.mxu1 %v145_v33 }
  0x47   :  { %323 = vmatmul.mubr.f32.vlgmr.msra.gmra.mxu0 %v57_v30 }
 0x107   :  { %v140_v34 = vpop.f32.mrf.mxu0 }
 0x108   :  { %v144_v35 = vmax.f32 %v140_v34, 0.0 }
 0x109   :  { %v324_v36 = vpop.f32.mrf.mxu0 }
 0x10a   :  { %358 = vmatmul.mubr.f32.vlgmr.msra.gmra.mxu1 %v144_v35 }
 0x1ca   :  { %v234_v38 = vpop.f32.mrf.mxu1 }
 0x1cb   :  { %v235_v39 = vadd.f32 %v255_v37, %v234_v38 }
 0x1cc   :  { %v359_v40 = vpop.f32.mrf.mxu1 }
 0x1cd   :  { %238 = vst [vmem:[#allocation8] sm:$0xff] %v235_v39 }
 0x1ce   :  { %439 = shalt.err (!%p436_p5)
}
 0x1cf   :  { %248 = dma.vmem_to_hbm [thread:$0]  %s246_s6, 128, %s540_s4, [#allocation4]  }
 0x1d0   :  { %452 = dma.done.wait [#allocation4], 128  }
 0x1d1   :  { %453 = vsyncadd [#allocation4], 4294967168 }
 0x1d2   :  { %252 = vsyncpa [#allocation3], 1 }
 0x1d3   :  { %253 = vsyncpa [#allocation6], 1 }
 0x1d4   :  { %254 = vsyncpa [#allocation4], 1 }

</bundles_post_ra>
